<compile_context>
chip_gen: v5e
topology: v5e:2x2
jax: 0.10.0
libtpu: 0.0.40
codegen_flags: <defaults>
</compile_context>

<pallas_src>
import functools

import jax
import jax.numpy as jnp
from jax import lax
from jax.experimental import pallas as pl
from jax.experimental.pallas import tpu as pltpu


def _round_up(x: int, m: int) -> int:
    return ((x + m - 1) // m) * m


def _cdiv(a: int, b: int) -> int:
    return -(-a // b)


def _vmem_capacity_bytes() -> int:
    try:
        return int(pltpu.get_tpu_info().vmem_capacity_bytes)
    except Exception:
        return 64 * 1024 * 1024  # conservative (v7x per-TensorCore)


# dot_general numbers contracting the last dim of both operands:
#   x (tm, K)  @  w (N, K)  ->  (tm, N)      (nn.Linear layout, no transpose)
_NT_DIMS = (((1,), (1,)), ((), ()))


def _linear_resident_kernel(x_ref, w_ref, b_ref, o_ref):
    # x_ref: (tm, Kp), w_ref: (Np, Kp), b_ref: (1, Np), o_ref: (tm, Np) f32
    acc = lax.dot_general(
        x_ref[...], w_ref[...], _NT_DIMS, preferred_element_type=jnp.float32
    )
    o_ref[...] = (acc + b_ref[...]).astype(o_ref.dtype)


def _linear_tiled_kernel(x_ref, w_ref, b_ref, o_ref):
    # x_ref: (tm, tk), w_ref: (tn, tk), b_ref: (1, tn), o_ref: (tm, tn) f32.
    # o_ref's block index is invariant in k -> it stays resident in VMEM
    # across the K loop and serves as the accumulator.
    k = pl.program_id(2)
    partial = lax.dot_general(
        x_ref[...], w_ref[...], _NT_DIMS, preferred_element_type=jnp.float32
    )

    @pl.when(k == 0)
    def _():
        o_ref[...] = partial          # first step: write, no zero-init store

    @pl.when(k > 0)
    def _():
        o_ref[...] += partial

    @pl.when(k == pl.num_programs(2) - 1)
    def _():
        o_ref[...] += b_ref[...]      # bias added exactly once


@functools.partial(
    jax.jit,
    static_argnames=(
        "tm_max", "tn_max", "tk_max",
        "resident_weight_bytes", "small_bypass_elems", "compute_dtype",
    ),
)
def separate_encoder_layer_forward(
    x, weight, bias, *,
    tm_max=None, tn_max=None, tk_max=None,
    resident_weight_bytes=12 * 1024 * 1024,
    small_bypass_elems=1 << 16,
    compute_dtype=None,
):
    """y = x @ weight.T + bias over the last axis of x.

    x:      (..., input_dim)
    weight: (output_dim, input_dim)   (nn.Linear layout, used as-is)
    bias:   (output_dim,)
    compute_dtype: e.g. jnp.bfloat16 for a ~2x MXU/HBM win (f32 accumulation
                   kept); None -> exact f32 nn.Linear semantics.
    """
    orig_shape = x.shape
    k_dim = orig_shape[-1]
    n_dim = weight.shape[0]
    m_dim = 1
    for d in orig_shape[:-1]:
        m_dim *= d

    # --- tiny-problem bypass: XLA's fused GEMM is strictly better here ------
    if m_dim * k_dim * n_dim <= small_bypass_elems:
        y = jnp.dot(x.reshape(m_dim, k_dim), weight.T,
                    preferred_element_type=jnp.float32) + bias
        return y.astype(x.dtype).reshape(*orig_shape[:-1], n_dim)

    # --- generation-aware tile / VMEM budget ---------------------------------
    vmem_cap = _vmem_capacity_bytes()
    vmem_limit = max(32 * 2**20, min(int(vmem_cap * 0.7), 100 * 2**20))
    big_vmem = vmem_cap >= 96 * 2**20            # v5e / v6e (128 MiB)
    if tm_max is None:
        tm_max = 512
    if tn_max is None:
        tn_max = 1024 if big_vmem else 512
    if tk_max is None:
        tk_max = 2048 if big_vmem else 1024

    cdt = compute_dtype if compute_dtype is not None else x.dtype
    isz = jnp.dtype(cdt).itemsize
    sublane = 8 * max(1, 4 // isz)               # 8 for f32, 16 for bf16

    tm = min(tm_max, _round_up(m_dim, sublane))
    tn = min(tn_max, _round_up(n_dim, 128))
    tk = min(tk_max, _round_up(k_dim, 128))
    # Guarantee >=2 iterations on the parallel M axis when possible (v7x 2 TCs).
    if m_dim >= 2 * sublane and _cdiv(m_dim, tm) < 2:
        tm = _round_up(_cdiv(m_dim, 2), sublane)

    pad_n = _round_up(n_dim, tn)
    pad_k = _round_up(k_dim, tk)

    # --- prepare operands (pad only when required; zero K-pad keeps the
    #     reduction exact; padded N columns are sliced off the output) --------
    x2d = x.reshape(m_dim, k_dim)
    w = weight
    if compute_dtype is not None:
        x2d = x2d.astype(compute_dtype)
        w = w.astype(compute_dtype)
    if pad_k != k_dim:
        x2d = jnp.pad(x2d, ((0, 0), (0, pad_k - k_dim)))
        w = jnp.pad(w, ((0, 0), (0, pad_k - k_dim)))
    if pad_n != n_dim:
        w = jnp.pad(w, ((0, pad_n - n_dim), (0, 0)))
        b = jnp.pad(bias, (0, pad_n - n_dim))
    else:
        b = bias
    b2d = b.reshape(1, pad_n).astype(jnp.float32)

    cost = pl.CostEstimate(
        flops=2 * m_dim * pad_k * pad_n,
        transcendentals=0,
        bytes_accessed=(x2d.size * isz + w.size * isz
                        + m_dim * pad_n * 4 + pad_n * 4),
    )

    w_bytes = pad_n * pad_k * isz
    resident_fit = (
        w_bytes <= resident_weight_bytes
        and (w_bytes + 2 * tm * pad_k * isz + 2 * tm * pad_n * 4 + pad_n * 4)
            <= int(vmem_limit * 0.8)
    )

    if resident_fit:
        # ------- weight-resident single-pass path ----------------------------
        grid = (_cdiv(m_dim, tm),)
        out2d = pl.pallas_call(
            _linear_resident_kernel,
            out_shape=jax.ShapeDtypeStruct((m_dim, pad_n), jnp.float32),
            grid_spec=pltpu.PrefetchScalarGridSpec(
                num_scalar_prefetch=0,
                grid=grid,
                in_specs=[
                    pl.BlockSpec((tm, pad_k), lambda i: (i, 0)),
                    pl.BlockSpec((pad_n, pad_k), lambda i: (0, 0)),
                    pl.BlockSpec((1, pad_n), lambda i: (0, 0)),
                ],
                out_specs=pl.BlockSpec((tm, pad_n), lambda i: (i, 0)),
            ),
            compiler_params=pltpu.CompilerParams(
                dimension_semantics=("parallel",),
                vmem_limit_bytes=vmem_limit,
            ),
            cost_estimate=cost,
        )(x2d, w, b2d)
    else:
        # ------- general tiled path (K reduction innermost) -------------------
        grid = (_cdiv(m_dim, tm), pad_n // tn, pad_k // tk)
        out2d = pl.pallas_call(
            _linear_tiled_kernel,
            out_shape=jax.ShapeDtypeStruct((m_dim, pad_n), jnp.float32),
            grid_spec=pltpu.PrefetchScalarGridSpec(
                num_scalar_prefetch=0,
                grid=grid,
                in_specs=[
                    pl.BlockSpec((tm, tk), lambda i, j, k: (i, k)),
                    pl.BlockSpec((tn, tk), lambda i, j, k: (j, k)),
                    pl.BlockSpec((1, tn), lambda i, j, k: (0, j)),
                ],
                out_specs=pl.BlockSpec((tm, tn), lambda i, j, k: (i, j)),
            ),
            compiler_params=pltpu.CompilerParams(
                dimension_semantics=("parallel", "parallel", "arbitrary"),
                vmem_limit_bytes=vmem_limit,
            ),
            cost_estimate=cost,
        )(x2d, w, b2d)

    if pad_n != n_dim:
        out2d = out2d[:, :n_dim]
    out = out2d.reshape(*orig_shape[:-1], n_dim)
    if out.dtype != x.dtype:
        out = out.astype(x.dtype)
    return out


if __name__ == "__main__":
    key = jax.random.PRNGKey(0)
    kx, kw, kb, kx2 = jax.random.split(key, 4)

    # Shapes implied by the module: (batch, seq, input_dim) -> (..., output_dim)
    batch, seq, input_dim, output_dim = 2, 8, 32, 32
    bound = 1.0 / (input_dim ** 0.5)
    x = jax.random.normal(kx, (batch, seq, input_dim), dtype=jnp.float32)
    weight = jax.random.uniform(kw, (output_dim, input_dim),
                                minval=-bound, maxval=bound, dtype=jnp.float32)
    bias = jax.random.uniform(kb, (output_dim,),
                              minval=-bound, maxval=bound, dtype=jnp.float32)
    y_ref = x @ weight.T + bias

    # 1) Pallas weight-resident path (forced even at this tiny demo size).
    y = separate_encoder_layer_forward(x, weight, bias, small_bypass_elems=0)
    y = jax.block_until_ready(y)
    assert y.shape == (batch, seq, output_dim)
    assert jnp.allclose(y, y_ref, atol=1e-5, rtol=1e-5)

    # 2) General tiled path (multi-tile N and K, ragged M edge) at modest size.
    m2, k2d, n2 = 96, 384, 320
    xb = jax.random.normal(kx2, (2, m2 // 2, k2d), dtype=jnp.float32)
    wb = jax.random.normal(kw, (n2, k2d), dtype=jnp.float32) * 0.02
    bb = jax.random.normal(kb, (n2,), dtype=jnp.float32) * 0.02
    yb = separate_encoder_layer_forward(
        xb, wb, bb,
        tm_max=64, tn_max=128, tk_max=128,
        resident_weight_bytes=0, small_bypass_elems=0)
    yb = jax.block_until_ready(yb)
    yb_ref = xb @ wb.T + bb
    assert yb.shape == (2, m2 // 2, n2)
    assert jnp.allclose(yb, yb_ref, atol=1e-3, rtol=1e-3)

    # 3) Default auto path (tiny-problem bypass) matches as well.
    y2 = jax.block_until_ready(separate_encoder_layer_forward(x, weight, bias))
    assert jnp.allclose(y2, y_ref, atol=1e-5, rtol=1e-5)

    print("KERNEL_OK")
</pallas_src>

<mosaic_0001>
module attributes {stable_mosaic.version = 11 : i64} {
  func.func @_linear_resident_kernel(%arg0: i32, %arg1: memref<8x128xf32, #tpu.memory_space<vmem>>, %arg2: memref<128x128xf32, #tpu.memory_space<vmem>>, %arg3: memref<1x128xf32, #tpu.memory_space<vmem>>, %arg4: memref<8x128xf32, #tpu.memory_space<vmem>>) attributes {dimension_semantics = [#tpu.dimension_semantics<parallel>], iteration_bounds = array<i64: 2>, scalar_prefetch = 0 : i64, scratch_operands = 0 : i64, tpu.core_type = #tpu.core_type<tc>, window_params = [{transform_indices = @transform_0, window_bounds = array<i64: 8, 128>}, {pipeline_mode = #tpu.pipeline_mode<synchronous>, transform_indices = @transform_1, window_bounds = array<i64: 128, 128>}, {pipeline_mode = #tpu.pipeline_mode<synchronous>, transform_indices = @transform_2, window_bounds = array<i64: 1, 128>}, {transform_indices = @transform_3, window_bounds = array<i64: 8, 128>}]} {
    %c0 = arith.constant 0 : index
    %c0_0 = arith.constant 0 : index
    %0 = vector.load %arg1[%c0, %c0_0] : memref<8x128xf32, #tpu.memory_space<vmem>>, vector<8x128xf32>
    %c0_1 = arith.constant 0 : index
    %c0_2 = arith.constant 0 : index
    %1 = vector.load %arg2[%c0_1, %c0_2] : memref<128x128xf32, #tpu.memory_space<vmem>>, vector<128x128xf32>
    %cst = arith.constant dense<0.000000e+00> : vector<8x128xf32>
    %2 = tpu.matmul %0, %1, %cst {dimension_numbers = #tpu.dot_dimension_numbers<[1], [1], [0], [0], [0, 0, 1, 0], [], []>} : vector<8x128xf32>, vector<128x128xf32>, vector<8x128xf32> -> vector<8x128xf32>
    %c0_3 = arith.constant 0 : index
    %c0_4 = arith.constant 0 : index
    %3 = vector.load %arg3[%c0_3, %c0_4] : memref<1x128xf32, #tpu.memory_space<vmem>>, vector<1x128xf32>
    %4 = vector.broadcast %3 : vector<1x128xf32> to vector<8x128xf32>
    %5 = arith.addf %2, %4 : vector<8x128xf32>
    %c0_5 = arith.constant 0 : index
    %c0_6 = arith.constant 0 : index
    %6 = vector.load %arg4[%c0_5, %c0_6] : memref<8x128xf32, #tpu.memory_space<vmem>>, vector<8x128xf32>
    tpu.vector_store %arg4[%c0_5, %c0_6], %5 {strides = array<i32>} : memref<8x128xf32, #tpu.memory_space<vmem>>, vector<8x128xf32>,
    return
  }
  func.func @transform_0(%arg0: i32) -> (i32, i32) {
    %c0_i32 = arith.constant 0 : i32
    %c0_i32_0 = arith.constant 0 : i32
    return %arg0, %c0_i32 : i32, i32
  }
  func.func @transform_1(%arg0: i32) -> (i32, i32) {
    %c0_i32 = arith.constant 0 : i32
    %c0_i32_0 = arith.constant 0 : i32
    %c0_i32_1 = arith.constant 0 : i32
    return %c0_i32, %c0_i32_0 : i32, i32
  }
  func.func @transform_2(%arg0: i32) -> (i32, i32) {
    %c0_i32 = arith.constant 0 : i32
    %c0_i32_0 = arith.constant 0 : i32
    %c0_i32_1 = arith.constant 0 : i32
    return %c0_i32, %c0_i32_0 : i32, i32
  }
  func.func @transform_3(%arg0: i32) -> (i32, i32) {
    %c0_i32 = arith.constant 0 : i32
    %c0_i32_0 = arith.constant 0 : i32
    return %arg0, %c0_i32 : i32, i32
  }
}

</mosaic_0001>

<bundles_post_ra>
// kernel: separate_encoder_layer_forward.1
= control target key start
LH: loop header
LB: loop body
LE: loop exit
PB: predicated region body
PF: predicated region fallthrough
CT: control target
= control target key end

     0   :  { %s307_s12 = smov 0   ;;  %s379_s0 = inlined_call_operand.vmem [shape: f32[16,128], index: 0, kind: input, shape index: {}]   ;;  %s380_s1 = inlined_call_operand.vmem [shape: f32[128,128], index: 1, kind: input, shape index: {}]   ;;  %s381_s2 = inlined_call_operand.vmem [shape: f32[1,128], index: 2, kind: input, shape index: {}]   ;;  %s382_s3 = inlined_call_operand.vmem [shape: f32[16,128], index: 3, kind: output, shape index: {}]  }
   0x1 LB: > { %s261_s13 = sadd.s32 4294967295, %s285_s12   ;;  %p265_p0 = scmp.ge.s32.totalorder %s285_s12, 1  ;;  %s285_s12 = sphi %s307_s12, %s13_s12  }
   0x2   : > { %p136_p1 = scmp.lt.s32.totalorder %s285_s12, 3 }
   0x4   : > { %p137_p2 = pnand %p265_p0, %p136_p1 }
   0x5   : > { %p158_p3 = scmp.lt.s32.totalorder (!%p137_p2), %s261_s13, 1 }
   0x6   : > { %140 = sbr.rel (%p137_p2) target bundleno = 204 (0xcc), region = 32 }
   0xb   : > { %v182_v0 = vld [vmem:[%s380_s1 + $0x78] sm:$0xff]  ;;  %v181_v1 = vld [vmem:[%s380_s1 + $0x70] sm:$0xff]  ;;  %v180_v2 = vld [vmem:[%s380_s1 + $0x68] sm:$0xff]  ;;  %s384_s13 = smov (!%p158_p3, %s261_s13), 1 }
   0xc   : > { %187 = vmatpush.xpose.msra.mxu0 %v182_v0  ;;  %v179_v3 = vld [vmem:[%s380_s1 + $0x60] sm:$0xff]  ;;  %v178_v4 = vld [vmem:[%s380_s1 + $0x58] sm:$0xff]  ;;  %v177_v5 = vld [vmem:[%s380_s1 + $0x50] sm:$0xff]  ;;  %s266_s19 = sshll.u32 %s384_s13, 3 }
   0xd   : > { %v176_v6 = vld [vmem:[%s380_s1 + $0x48] sm:$0xff]  ;;  %v175_v7 = vld [vmem:[%s380_s1 + $0x40] sm:$0xff]  ;;  %v174_v8 = vld [vmem:[%s380_s1 + $0x38] sm:$0xff]  ;;  %s161_s24 = scalar_lea.vmem %s379_s0, %s266_s19  ;;  %s165_s13 = scalar_lea.vmem %s382_s3, %s266_s19 }
   0xe   : > { %v173_v9 = vld [vmem:[%s380_s1 + $0x30] sm:$0xff]  ;;  %v172_v10 = vld [vmem:[%s380_s1 + $0x28] sm:$0xff]  ;;  %v171_v11 = vld [vmem:[%s380_s1 + $0x20] sm:$0xff] }
   0xf   : > { %v170_v12 = vld [vmem:[%s380_s1 + $0x18] sm:$0xff]  ;;  %v169_v13 = vld [vmem:[%s380_s1 + $0x10] sm:$0xff]  ;;  %v168_v14 = vld [vmem:[%s380_s1 + $0x8] sm:$0xff] }
  0x10   : > { %188 = vmatpush.xpose.msra.mxu0 %v181_v1  ;;  %v167_v15 = vld [vmem:[%s380_s1] sm:$0xff] }
  0x11   : > { %v166_v16 = vld [vmem:[%s161_s24] sm:$0xff] }
  0x12   : > { %v278_v17 = vld [vmem:[%s381_s2] ss:$0 sm:$0xff] }
  0x14   : > { %189 = vmatpush.xpose.msra.mxu0 %v180_v2 }
  0x18   : > { %190 = vmatpush.xpose.msra.mxu0 %v179_v3 }
  0x1c   : > { %191 = vmatpush.xpose.msra.mxu0 %v178_v4 }
  0x20   : > { %192 = vmatpush.xpose.msra.mxu0 %v177_v5 }
  0x24   : > { %193 = vmatpush.xpose.msra.mxu0 %v176_v6 }
  0x28   : > { %194 = vmatpush.xpose.msra.mxu0 %v175_v7 }
  0x2c   : > { %195 = vmatpush.xpose.msra.mxu0 %v174_v8 }
  0x30   : > { %196 = vmatpush.xpose.msra.mxu0 %v173_v9 }
  0x34   : > { %197 = vmatpush.xpose.msra.mxu0 %v172_v10 }
  0x38   : > { %198 = vmatpush.xpose.msra.mxu0 %v171_v11 }
  0x3c   : > { %199 = vmatpush.xpose.msra.mxu0 %v170_v12 }
  0x40   : > { %200 = vmatpush.xpose.msra.mxu0 %v169_v13 }
  0x44   : > { %201 = vmatpush.xpose.msra.mxu0 %v168_v14 }
  0x48   : > { %202 = vmatpush.xpose.msra.mxu0 %v167_v15 }
  0x4b   : > { %203 = vmatmul.f32.vlgmr.msra.gmra.mxu0 %v166_v16 }
  0xc8   : > { %v204_v18 = vpop.f32.mrf.mxu0 }
  0xc9   : > { %v205_v19 = vadd.f32 %v278_v17, %v204_v18 }
  0xcb   : > { %207 = vst [vmem:[%s165_s13] sm:$0xff] %v205_v19 }
  0xcc PF: > { %s13_s12 = sadd.s32 1, %s285_s12  }
  0xcd   : > { %p10_p4 = scmp.ge.s32.totalorder %s13_s12, 4  }
  0xcf   :  { %12 = sbr.rel (!%p10_p4) target bundleno = 1 (0x1), region = 62 }

</bundles_post_ra>
